<compile_context>
chip_gen: v6e
topology: v6e:2x2x1
jax: 0.10.0
libtpu: 0.0.40
codegen_flags: <defaults>
</compile_context>

<pallas_src>
import functools

import jax
import jax.numpy as jnp
from jax.experimental import pallas as pl
from jax.experimental.pallas import tpu as pltpu

LN_EPS = 1e-5  # PyTorch nn.LayerNorm default
LANE = 128     # TPU vreg lane width


def _round_up(x, m):
    return (x + m - 1) // m * m


def _prop_mb_kernel(obs_ref,
                    w1_ref, b1_ref, g_ref, beta_ref,
                    w2_ref, b2_ref,
                    w3_ref, b3_ref,
                    w4_ref, b4_ref,
                    out_ref, *, inv_feature_dim):
    x = obs_ref[...]                                                    # (TB, R)

    # trunk: Linear -> LayerNorm -> Tanh (all lane dims padded to 128)
    h = jnp.dot(x, w1_ref[...], preferred_element_type=jnp.float32)    # (TB, Fp)
    h = h + b1_ref[...]
    # Padded lanes of h are exactly zero (zero weight cols + zero bias lanes),
    # so a full-lane sum equals the true-width sum; divide by the TRUE feature_dim.
    s = jnp.sum(h, axis=-1, keepdims=True)
    s2 = jnp.sum(h * h, axis=-1, keepdims=True)
    mu = s * inv_feature_dim
    var = s2 * inv_feature_dim - mu * mu
    h = (h - mu) * jax.lax.rsqrt(var + LN_EPS)
    h = h * g_ref[...] + beta_ref[...]      # gamma == 0 on padded lanes -> re-zeroed
    h = jnp.tanh(h)

    # MB: Linear -> ReLU -> Linear -> ReLU -> Linear (output padded to 128 lanes)
    z = jnp.dot(h, w2_ref[...], preferred_element_type=jnp.float32) + b2_ref[...]
    z = jnp.maximum(z, 0.0)
    z = jnp.dot(z, w3_ref[...], preferred_element_type=jnp.float32) + b3_ref[...]
    z = jnp.maximum(z, 0.0)
    o = jnp.dot(z, w4_ref[...], preferred_element_type=jnp.float32) + b4_ref[...]

    out_ref[...] = o.astype(out_ref.dtype)                              # (TB, 128)


def prop_mb_efficient(obs, padded_params, feature_dim, *, block_b=256):
    """Fused PropMBEfficient forward. Returns (m, b), each (B, 1)."""
    B, R = obs.shape
    TB = min(block_b, _round_up(B, 8))       # batch tile (sublane-aligned)
    Bp = _round_up(B, TB)
    if Bp != B:
        obs = jnp.pad(obs, ((0, Bp - B), (0, 0)))

    p = padded_params
    operands = (
        obs,
        p["w1"], p["b1"], p["ln_g"], p["ln_b"],
        p["w2"], p["b2"],
        p["w3"], p["b3"],
        p["w4"], p["b4"],
    )

    def resident(a):
        # Same block every grid step -> weights stay resident in VMEM.
        return pl.BlockSpec(a.shape, lambda i: (0,) * a.ndim)

    in_specs = [pl.BlockSpec((TB, R), lambda i: (i, 0))]
    in_specs += [resident(a) for a in operands[1:]]

    Fp = p["w1"].shape[1]
    Hp = p["w2"].shape[1]
    flops = 2 * Bp * (R * Fp + Fp * Hp + Hp * Hp + Hp * LANE)
    transcendentals = Bp * Fp + Bp                        # tanh lanes + rsqrt
    bytes_accessed = 4 * (obs.size + sum(a.size for a in operands[1:]) + Bp * LANE)

    out = pl.pallas_call(
        functools.partial(_prop_mb_kernel,
                          inv_feature_dim=1.0 / float(feature_dim)),
        out_shape=jax.ShapeDtypeStruct((Bp, LANE), jnp.float32),
        grid=(Bp // TB,),
        in_specs=in_specs,
        out_specs=pl.BlockSpec((TB, LANE), lambda i: (i, 0)),
        compiler_params=pltpu.CompilerParams(
            dimension_semantics=("parallel",)),
        cost_estimate=pl.CostEstimate(flops=flops,
                                      transcendentals=transcendentals,
                                      bytes_accessed=bytes_accessed),
    )(*operands)

    m = out[:B, 0:1]
    b = out[:B, 1:2]
    return m, b


def init_params(key, repr_dim, feature_dim, hidden_dim):
    """Synthetic init; shapes/layout match the PyTorch module (W stored (in, out))."""
    ks = jax.random.split(key, 8)

    def lin(kw, kb, fan_in, fan_out):
        bound = 1.0 / jnp.sqrt(jnp.float32(fan_in))
        w = jax.random.uniform(kw, (fan_in, fan_out), jnp.float32, -bound, bound)
        b = jax.random.uniform(kb, (1, fan_out), jnp.float32, -bound, bound)
        return w, b

    w1, b1 = lin(ks[0], ks[1], repr_dim, feature_dim)
    w2, b2 = lin(ks[2], ks[3], feature_dim, hidden_dim)
    w3, b3 = lin(ks[4], ks[5], hidden_dim, hidden_dim)
    w4, b4 = lin(ks[6], ks[7], hidden_dim, 2)
    return {
        "w1": w1, "b1": b1,
        "ln_g": jnp.ones((1, feature_dim), jnp.float32),
        "ln_b": jnp.zeros((1, feature_dim), jnp.float32),
        "w2": w2, "b2": b2,
        "w3": w3, "b3": b3,
        "w4": w4, "b4": b4,
    }


def pad_params(params):
    """Zero-pad lane (last) dims and matmul contraction dims up to 128."""
    def pad2(a, rows, cols):
        r, c = a.shape
        return jnp.pad(a, ((0, rows - r), (0, cols - c)))

    p = params
    R = p["w1"].shape[0]
    F = p["w1"].shape[1]
    H = p["w2"].shape[1]
    Fp = _round_up(F, LANE)
    Hp = _round_up(H, LANE)
    return {
        "w1": pad2(p["w1"], R, Fp),
        "b1": pad2(p["b1"], 1, Fp),
        "ln_g": pad2(p["ln_g"], 1, Fp),   # padded gamma lanes are ZERO (keeps padding zero)
        "ln_b": pad2(p["ln_b"], 1, Fp),
        "w2": pad2(p["w2"], Fp, Hp),
        "b2": pad2(p["b2"], 1, Hp),
        "w3": pad2(p["w3"], Hp, Hp),
        "b3": pad2(p["b3"], 1, Hp),
        "w4": pad2(p["w4"], Hp, LANE),
        "b4": pad2(p["b4"], 1, LANE),
    }


def _reference(obs, p):
    """Pure-JAX reference (unpadded params) for a numerical sanity check."""
    h = obs @ p["w1"] + p["b1"]
    mu = jnp.mean(h, axis=-1, keepdims=True)
    var = jnp.mean((h - mu) ** 2, axis=-1, keepdims=True)
    h = (h - mu) / jnp.sqrt(var + LN_EPS) * p["ln_g"] + p["ln_b"]
    h = jnp.tanh(h)
    z = jnp.maximum(h @ p["w2"] + p["b2"], 0.0)
    z = jnp.maximum(z @ p["w3"] + p["b3"], 0.0)
    o = z @ p["w4"] + p["b4"]
    return o[..., 0:1], o[..., 1:2]


if __name__ == "__main__":
    key = jax.random.PRNGKey(0)
    k_obs, k_par = jax.random.split(key)

    batch, repr_dim, feature_dim, hidden_dim = 8, 32, 64, 32
    obs = jax.random.normal(k_obs, (batch, repr_dim), jnp.float32)
    params = init_params(k_par, repr_dim, feature_dim, hidden_dim)
    padded = pad_params(params)

    m, b = prop_mb_efficient(obs, padded, feature_dim)
    jax.block_until_ready((m, b))

    m_ref, b_ref = _reference(obs, params)
    assert m.shape == (batch, 1) and b.shape == (batch, 1)
    assert jnp.allclose(m, m_ref, atol=1e-4, rtol=1e-4)
    assert jnp.allclose(b, b_ref, atol=1e-4, rtol=1e-4)

    print("KERNEL_OK")
</pallas_src>

<mosaic_0001>
module attributes {stable_mosaic.version = 11 : i64} {
  func.func @_prop_mb_kernel(%arg0: i32, %arg1: memref<8x32xf32, #tpu.memory_space<vmem>>, %arg2: memref<32x128xf32, #tpu.memory_space<vmem>>, %arg3: memref<1x128xf32, #tpu.memory_space<vmem>>, %arg4: memref<1x128xf32, #tpu.memory_space<vmem>>, %arg5: memref<1x128xf32, #tpu.memory_space<vmem>>, %arg6: memref<128x128xf32, #tpu.memory_space<vmem>>, %arg7: memref<1x128xf32, #tpu.memory_space<vmem>>, %arg8: memref<128x128xf32, #tpu.memory_space<vmem>>, %arg9: memref<1x128xf32, #tpu.memory_space<vmem>>, %arg10: memref<128x128xf32, #tpu.memory_space<vmem>>, %arg11: memref<1x128xf32, #tpu.memory_space<vmem>>, %arg12: memref<8x128xf32, #tpu.memory_space<vmem>>) attributes {dimension_semantics = [#tpu.dimension_semantics<parallel>], iteration_bounds = array<i64: 1>, scalar_prefetch = 0 : i64, scratch_operands = 0 : i64, tpu.core_type = #tpu.core_type<tc>, window_params = [{transform_indices = @transform_0, window_bounds = array<i64: 8, 32>}, {pipeline_mode = #tpu.pipeline_mode<synchronous>, transform_indices = @transform_1, window_bounds = array<i64: 32, 128>}, {pipeline_mode = #tpu.pipeline_mode<synchronous>, transform_indices = @transform_2, window_bounds = array<i64: 1, 128>}, {pipeline_mode = #tpu.pipeline_mode<synchronous>, transform_indices = @transform_3, window_bounds = array<i64: 1, 128>}, {pipeline_mode = #tpu.pipeline_mode<synchronous>, transform_indices = @transform_4, window_bounds = array<i64: 1, 128>}, {pipeline_mode = #tpu.pipeline_mode<synchronous>, transform_indices = @transform_5, window_bounds = array<i64: 128, 128>}, {pipeline_mode = #tpu.pipeline_mode<synchronous>, transform_indices = @transform_6, window_bounds = array<i64: 1, 128>}, {pipeline_mode = #tpu.pipeline_mode<synchronous>, transform_indices = @transform_7, window_bounds = array<i64: 128, 128>}, {pipeline_mode = #tpu.pipeline_mode<synchronous>, transform_indices = @transform_8, window_bounds = array<i64: 1, 128>}, {pipeline_mode = #tpu.pipeline_mode<synchronous>, transform_indices = @transform_9, window_bounds = array<i64: 128, 128>}, {pipeline_mode = #tpu.pipeline_mode<synchronous>, transform_indices = @transform_10, window_bounds = array<i64: 1, 128>}, {transform_indices = @transform_11, window_bounds = array<i64: 8, 128>}]} {
    %c0 = arith.constant 0 : index
    %c0_0 = arith.constant 0 : index
    %0 = vector.load %arg1[%c0, %c0_0] : memref<8x32xf32, #tpu.memory_space<vmem>>, vector<8x32xf32>
    %c0_1 = arith.constant 0 : index
    %c0_2 = arith.constant 0 : index
    %1 = vector.load %arg2[%c0_1, %c0_2] : memref<32x128xf32, #tpu.memory_space<vmem>>, vector<32x128xf32>
    %cst = arith.constant dense<0.000000e+00> : vector<8x128xf32>
    %2 = tpu.matmul %0, %1, %cst {dimension_numbers = #tpu.dot_dimension_numbers<[1], [0], [0], [1], [0, 0, 1, 1], [], []>} : vector<8x32xf32>, vector<32x128xf32>, vector<8x128xf32> -> vector<8x128xf32>
    %c0_3 = arith.constant 0 : index
    %c0_4 = arith.constant 0 : index
    %3 = vector.load %arg3[%c0_3, %c0_4] : memref<1x128xf32, #tpu.memory_space<vmem>>, vector<1x128xf32>
    %4 = vector.broadcast %3 : vector<1x128xf32> to vector<8x128xf32>
    %5 = arith.addf %2, %4 : vector<8x128xf32>
    %cst_5 = arith.constant dense<0.000000e+00> : vector<8xf32>
    %6 = vector.multi_reduction <add>, %5, %cst_5 [1] : vector<8x128xf32> to vector<8xf32>
    %7 = vector.shape_cast %6 : vector<8xf32> to vector<8x1xf32>
    %8 = arith.mulf %5, %5 : vector<8x128xf32>
    %cst_6 = arith.constant dense<0.000000e+00> : vector<8xf32>
    %9 = vector.multi_reduction <add>, %8, %cst_6 [1] : vector<8x128xf32> to vector<8xf32>
    %10 = vector.shape_cast %9 : vector<8xf32> to vector<8x1xf32>
    %cst_7 = arith.constant 1.562500e-02 : f32
    %11 = vector.broadcast %cst_7 : f32 to vector<8x1xf32>
    %12 = arith.mulf %7, %11 : vector<8x1xf32>
    %cst_8 = arith.constant 1.562500e-02 : f32
    %13 = vector.broadcast %cst_8 : f32 to vector<8x1xf32>
    %14 = arith.mulf %10, %13 : vector<8x1xf32>
    %15 = arith.mulf %12, %12 : vector<8x1xf32>
    %16 = arith.subf %14, %15 : vector<8x1xf32>
    %17 = vector.broadcast %12 : vector<8x1xf32> to vector<8x128xf32>
    %18 = arith.subf %5, %17 : vector<8x128xf32>
    %cst_9 = arith.constant 9.99999974E-6 : f32
    %19 = vector.broadcast %cst_9 : f32 to vector<8x1xf32>
    %20 = arith.addf %16, %19 : vector<8x1xf32>
    %21 = math.rsqrt %20 : vector<8x1xf32>
    %22 = vector.broadcast %21 : vector<8x1xf32> to vector<8x128xf32>
    %23 = arith.mulf %18, %22 : vector<8x128xf32>
    %c0_10 = arith.constant 0 : index
    %c0_11 = arith.constant 0 : index
    %24 = vector.load %arg4[%c0_10, %c0_11] : memref<1x128xf32, #tpu.memory_space<vmem>>, vector<1x128xf32>
    %25 = vector.broadcast %24 : vector<1x128xf32> to vector<8x128xf32>
    %26 = arith.mulf %23, %25 : vector<8x128xf32>
    %c0_12 = arith.constant 0 : index
    %c0_13 = arith.constant 0 : index
    %27 = vector.load %arg5[%c0_12, %c0_13] : memref<1x128xf32, #tpu.memory_space<vmem>>, vector<1x128xf32>
    %28 = vector.broadcast %27 : vector<1x128xf32> to vector<8x128xf32>
    %29 = arith.addf %26, %28 : vector<8x128xf32>
    %30 = math.tanh %29 : vector<8x128xf32>
    %c0_14 = arith.constant 0 : index
    %c0_15 = arith.constant 0 : index
    %31 = vector.load %arg6[%c0_14, %c0_15] : memref<128x128xf32, #tpu.memory_space<vmem>>, vector<128x128xf32>
    %cst_16 = arith.constant dense<0.000000e+00> : vector<8x128xf32>
    %32 = tpu.matmul %30, %31, %cst_16 {dimension_numbers = #tpu.dot_dimension_numbers<[1], [0], [0], [1], [0, 0, 1, 1], [], []>} : vector<8x128xf32>, vector<128x128xf32>, vector<8x128xf32> -> vector<8x128xf32>
    %c0_17 = arith.constant 0 : index
    %c0_18 = arith.constant 0 : index
    %33 = vector.load %arg7[%c0_17, %c0_18] : memref<1x128xf32, #tpu.memory_space<vmem>>, vector<1x128xf32>
    %34 = vector.broadcast %33 : vector<1x128xf32> to vector<8x128xf32>
    %35 = arith.addf %32, %34 : vector<8x128xf32>
    %cst_19 = arith.constant 0.000000e+00 : f32
    %36 = vector.broadcast %cst_19 : f32 to vector<8x128xf32>
    %37 = arith.maximumf %35, %36 : vector<8x128xf32>
    %c0_20 = arith.constant 0 : index
    %c0_21 = arith.constant 0 : index
    %38 = vector.load %arg8[%c0_20, %c0_21] : memref<128x128xf32, #tpu.memory_space<vmem>>, vector<128x128xf32>
    %cst_22 = arith.constant dense<0.000000e+00> : vector<8x128xf32>
    %39 = tpu.matmul %37, %38, %cst_22 {dimension_numbers = #tpu.dot_dimension_numbers<[1], [0], [0], [1], [0, 0, 1, 1], [], []>} : vector<8x128xf32>, vector<128x128xf32>, vector<8x128xf32> -> vector<8x128xf32>
    %c0_23 = arith.constant 0 : index
    %c0_24 = arith.constant 0 : index
    %40 = vector.load %arg9[%c0_23, %c0_24] : memref<1x128xf32, #tpu.memory_space<vmem>>, vector<1x128xf32>
    %41 = vector.broadcast %40 : vector<1x128xf32> to vector<8x128xf32>
    %42 = arith.addf %39, %41 : vector<8x128xf32>
    %cst_25 = arith.constant 0.000000e+00 : f32
    %43 = vector.broadcast %cst_25 : f32 to vector<8x128xf32>
    %44 = arith.maximumf %42, %43 : vector<8x128xf32>
    %c0_26 = arith.constant 0 : index
    %c0_27 = arith.constant 0 : index
    %45 = vector.load %arg10[%c0_26, %c0_27] : memref<128x128xf32, #tpu.memory_space<vmem>>, vector<128x128xf32>
    %cst_28 = arith.constant dense<0.000000e+00> : vector<8x128xf32>
    %46 = tpu.matmul %44, %45, %cst_28 {dimension_numbers = #tpu.dot_dimension_numbers<[1], [0], [0], [1], [0, 0, 1, 1], [], []>} : vector<8x128xf32>, vector<128x128xf32>, vector<8x128xf32> -> vector<8x128xf32>
    %c0_29 = arith.constant 0 : index
    %c0_30 = arith.constant 0 : index
    %47 = vector.load %arg11[%c0_29, %c0_30] : memref<1x128xf32, #tpu.memory_space<vmem>>, vector<1x128xf32>
    %48 = vector.broadcast %47 : vector<1x128xf32> to vector<8x128xf32>
    %49 = arith.addf %46, %48 : vector<8x128xf32>
    %c0_31 = arith.constant 0 : index
    %c0_32 = arith.constant 0 : index
    %50 = vector.load %arg12[%c0_31, %c0_32] : memref<8x128xf32, #tpu.memory_space<vmem>>, vector<8x128xf32>
    tpu.vector_store %arg12[%c0_31, %c0_32], %49 {strides = array<i32>} : memref<8x128xf32, #tpu.memory_space<vmem>>, vector<8x128xf32>,
    return
  }
  func.func @transform_0(%arg0: i32) -> (i32, i32) {
    %c0_i32 = arith.constant 0 : i32
    %c0_i32_0 = arith.constant 0 : i32
    return %arg0, %c0_i32 : i32, i32
  }
  func.func @transform_1(%arg0: i32) -> (i32, i32) {
    %c0_i32 = arith.constant 0 : i32
    %c0_i32_0 = arith.constant 0 : i32
    %c0_i32_1 = arith.constant 0 : i32
    return %c0_i32, %c0_i32_0 : i32, i32
  }
  func.func @transform_2(%arg0: i32) -> (i32, i32) {
    %c0_i32 = arith.constant 0 : i32
    %c0_i32_0 = arith.constant 0 : i32
    %c0_i32_1 = arith.constant 0 : i32
    return %c0_i32, %c0_i32_0 : i32, i32
  }
  func.func @transform_3(%arg0: i32) -> (i32, i32) {
    %c0_i32 = arith.constant 0 : i32
    %c0_i32_0 = arith.constant 0 : i32
    %c0_i32_1 = arith.constant 0 : i32
    return %c0_i32, %c0_i32_0 : i32, i32
  }
  func.func @transform_4(%arg0: i32) -> (i32, i32) {
    %c0_i32 = arith.constant 0 : i32
    %c0_i32_0 = arith.constant 0 : i32
    %c0_i32_1 = arith.constant 0 : i32
    return %c0_i32, %c0_i32_0 : i32, i32
  }
  func.func @transform_5(%arg0: i32) -> (i32, i32) {
    %c0_i32 = arith.constant 0 : i32
    %c0_i32_0 = arith.constant 0 : i32
    %c0_i32_1 = arith.constant 0 : i32
    return %c0_i32, %c0_i32_0 : i32, i32
  }
  func.func @transform_6(%arg0: i32) -> (i32, i32) {
    %c0_i32 = arith.constant 0 : i32
    %c0_i32_0 = arith.constant 0 : i32
    %c0_i32_1 = arith.constant 0 : i32
    return %c0_i32, %c0_i32_0 : i32, i32
  }
  func.func @transform_7(%arg0: i32) -> (i32, i32) {
    %c0_i32 = arith.constant 0 : i32
    %c0_i32_0 = arith.constant 0 : i32
    %c0_i32_1 = arith.constant 0 : i32
    return %c0_i32, %c0_i32_0 : i32, i32
  }
  func.func @transform_8(%arg0: i32) -> (i32, i32) {
    %c0_i32 = arith.constant 0 : i32
    %c0_i32_0 = arith.constant 0 : i32
    %c0_i32_1 = arith.constant 0 : i32
    return %c0_i32, %c0_i32_0 : i32, i32
  }
  func.func @transform_9(%arg0: i32) -> (i32, i32) {
    %c0_i32 = arith.constant 0 : i32
    %c0_i32_0 = arith.constant 0 : i32
    %c0_i32_1 = arith.constant 0 : i32
    return %c0_i32, %c0_i32_0 : i32, i32
  }
  func.func @transform_10(%arg0: i32) -> (i32, i32) {
    %c0_i32 = arith.constant 0 : i32
    %c0_i32_0 = arith.constant 0 : i32
    %c0_i32_1 = arith.constant 0 : i32
    return %c0_i32, %c0_i32_0 : i32, i32
  }
  func.func @transform_11(%arg0: i32) -> (i32, i32) {
    %c0_i32 = arith.constant 0 : i32
    %c0_i32_0 = arith.constant 0 : i32
    return %arg0, %c0_i32 : i32, i32
  }
}

</mosaic_0001>

<bundles_post_ra>
// kernel: tpu_custom_call.1
= control target key start
LH: loop header
LB: loop body
LE: loop exit
PB: predicated region body
PF: predicated region fallthrough
CT: control target
= control target key end

     0   :  { %16 = vsyncpa [#allocation3], 0  ;;  %s1025_s0 = inlined_call_operand.hbm [shape: f32[8,32], index: 0, kind: input, shape index: {}]   ;;  %s1026_s1 = inlined_call_operand.hbm [shape: f32[32,128], index: 1, kind: input, shape index: {}]   ;;  %s1027_s2 = inlined_call_operand.vmem [shape: f32[1,128], index: 2, kind: input, shape index: {}]   ;;  %s1028_s3 = inlined_call_operand.vmem [shape: f32[1,128], index: 3, kind: input, shape index: {}]   ;;  %s1029_s4 = inlined_call_operand.vmem [shape: f32[1,128], index: 4, kind: input, shape index: {}]   ;;  %s1030_s5 = inlined_call_operand.hbm [shape: f32[128,128], index: 5, kind: input, shape index: {}]   ;;  %s1031_s6 = inlined_call_operand.vmem [shape: f32[1,128], index: 6, kind: input, shape index: {}]   ;;  %s1032_s7 = inlined_call_operand.hbm [shape: f32[128,128], index: 7, kind: input, shape index: {}]   ;;  %s1033_s8 = inlined_call_operand.vmem [shape: f32[1,128], index: 8, kind: input, shape index: {}]   ;;  %s1034_s9 = inlined_call_operand.hbm [shape: f32[128,128], index: 9, kind: input, shape index: {}]   ;;  %s1035_s10 = inlined_call_operand.vmem [shape: f32[1,128], index: 10, kind: input, shape index: {}]   ;;  %s1036_s11 = inlined_call_operand.hbm [shape: f32[8,128], index: 11, kind: output, shape index: {}]  }
   0x1   :  { %17 = vsyncpa [#allocation6], 0 }
   0x2   :  { %18 = vsyncpa [#allocation9], 0 }
   0x3   :  { %19 = vsyncpa [#allocation4], 0  ;;  %s841_s17 = smov [#allocation5]  }
   0x4   :  { %s35_s18 = sshll.u32 %s841_s17, 4  ;;  %s36_s18 = int_to_ptr.vmem [resolvable:$true] %s35_s18 }
   0x5   :  { %s721_s19 = scalar_lea.vmem %s36_s18, 512  ;;  %p726_p1 = scmp.lt.s32.totalorder %s36_s18, %s36_s18 }
   0x6   :  { %p722_p0 = scmp.ne.s32.totalorder %s36_s18, %s721_s19  ;;  %p727_p2 = scmp.lt.s32.totalorder %s721_s19, %s721_s19 }
   0x8   :  { %p728_p3 = por %p727_p2, %p726_p1 }
   0xa   :  { %p729_p4 = pnand %p728_p3, %p722_p0 }
   0xc   :  { %732 = shalt.err (!%p729_p4)
}
   0xd   :  { %s842_s20 = smov 128   ;;  %s843_s21 = smov 8  }
   0xe   :  { %41 = dma.hbm_to_vmem [thread:$0]  %s1026_s1, 512, %s36_s18, [#allocation6], %s842_s20, %s842_s20, %s843_s21  }
   0xf   :  { %s844_s24 = smov [#allocation8]   ;;  %s845_s26 = smov [#allocation2]  }
  0x10   :  { %s67_s25 = sshll.u32 %s844_s24, 4  ;;  %s26_s27 = sshll.u32 %s845_s26, 4  ;;  %s68_s25 = int_to_ptr.vmem [resolvable:$true] %s67_s25  ;;  %s27_s27 = int_to_ptr.vmem [resolvable:$true] %s26_s27 }
  0x11   :  { %s741_s28 = scalar_lea.vmem %s68_s25, 2048  ;;  %p746_p6 = scmp.lt.s32.totalorder %s68_s25, %s68_s25 }
  0x12   :  { %p742_p5 = scmp.ne.s32.totalorder %s68_s25, %s741_s28  ;;  %p747_p7 = scmp.lt.s32.totalorder %s741_s28, %s741_s28 }
  0x14   :  { %p748_p8 = por %p747_p7, %p746_p6 }
  0x16   :  { %p749_p9 = pnand %p748_p8, %p742_p5 }
  0x18   :  { %752 = shalt.err (!%p749_p9)
}
  0x19   :  { %73 = dma.hbm_to_vmem [thread:$0]  %s1032_s7, 2048, %s68_s25, [#allocation9], %s842_s20, %s842_s20, %s843_s21  }
  0x1a   :  { %s761_s1 = scalar_lea.vmem %s27_s27, 128  ;;  %p766_p11 = scmp.lt.s32.totalorder %s27_s27, %s27_s27 }
  0x1b   :  { %p762_p10 = scmp.ne.s32.totalorder %s27_s27, %s761_s1  ;;  %p767_p12 = scmp.lt.s32.totalorder %s761_s1, %s761_s1 }
  0x1d   :  { %p768_p13 = por %p767_p12, %p766_p11 }
  0x1f   :  { %p769_p0 = pnand %p768_p13, %p762_p10 }
  0x21   :  { %772 = shalt.err (!%p769_p0)
}
  0x22   :  { %29 = dma.hbm_to_vmem [thread:$0]  %s1025_s0, 128, %s27_s27, [#allocation3]  }
  0x23   :  { %s846_s14 = smov [#allocation7]   ;;  %s847_s16 = smov [#allocation10]  }
  0x24   :  { %s53_s15 = sshll.u32 %s846_s14, 4  ;;  %s81_s17 = sshll.u32 %s847_s16, 4  ;;  %s54_s15 = int_to_ptr.vmem [resolvable:$true] %s53_s15  ;;  %s82_s17 = int_to_ptr.vmem [resolvable:$true] %s81_s17 }
  0x25   :  { %s781_s18 = scalar_lea.vmem %s54_s15, 2048  ;;  %p786_p2 = scmp.lt.s32.totalorder %s54_s15, %s54_s15 }
  0x26   :  { %p782_p1 = scmp.ne.s32.totalorder %s54_s15, %s781_s18  ;;  %p787_p3 = scmp.lt.s32.totalorder %s781_s18, %s781_s18 }
  0x28   :  { %p788_p4 = por %p787_p3, %p786_p2 }
  0x2a   :  { %p789_p5 = pnand %p788_p4, %p782_p1 }
  0x2c   :  { %792 = shalt.err (!%p789_p5)
}
  0x2d   :  { %59 = dma.hbm_to_vmem [thread:$0]  %s1030_s5, 2048, %s54_s15, [#allocation6], %s842_s20, %s842_s20, %s843_s21  }
  0x2e   :  { %s801_s0 = scalar_lea.vmem %s82_s17, 2048  ;;  %p806_p7 = scmp.lt.s32.totalorder %s82_s17, %s82_s17 }
  0x2f   :  { %p802_p6 = scmp.ne.s32.totalorder %s82_s17, %s801_s0  ;;  %p807_p8 = scmp.lt.s32.totalorder %s801_s0, %s801_s0 }
  0x31   :  { %p808_p9 = por %p807_p8, %p806_p7 }
  0x33   :  { %p809_p10 = pnand %p808_p9, %p802_p6 }
  0x35   :  { %812 = shalt.err (!%p809_p10)
}
  0x36   :  { %87 = dma.hbm_to_vmem [thread:$0]  %s1034_s9, 2048, %s82_s17, [#allocation9], %s842_s20, %s842_s20, %s843_s21  }
  0x37   :  { %833 = dma.done.wait [#allocation3], 128  }
  0x38   :  { %834 = vsyncadd [#allocation3], 4294967168 }
  0x39   :  { %835 = dma.done.wait [#allocation6], 2560  }
  0x3a   :  { %836 = vsyncadd [#allocation6], 4294964736 }
  0x3b   :  { %837 = dma.done.wait [#allocation9], 4096  }
  0x3c   :  { %838 = vsyncadd [#allocation9], 4294963200  ;;  %v848_v0 = vmov 0.0   ;;  %vm849_vm0 = vmmov 0   ;;  %v109_v1 = vld [vmem:[#allocation5 + $0x18] sm:$0xff]  ;;  %v108_v2 = vld [vmem:[#allocation5 + $0x10] sm:$0xff] }
  0x3d   :  { %583 = vmatprep.subr.mxu0 %v848_v0  ;;  %591 = vmatprep.mubr.msk.f32.mxu0 %vm849_vm0, %v848_v0  ;;  %v107_v3 = vld [vmem:[#allocation5 + $0x8] sm:$0xff]  ;;  %v106_v4 = vld [vmem:[#allocation5] sm:$0xff]  ;;  %v105_v5 = vld [vmem:[#allocation2] sm:$0xff]  ;;  %vm117_vm1 = vcmask 261120   ;;  %s850_s28 = smov [#allocation11]  }
  0x3e   :  { %594 = vmatprep.subr.mxu1 %v848_v0  ;;  %626 = vmatprep.mubr.msk.f32.mxu1 %vm849_vm0, %v848_v0  ;;  %v520_v6 = vld [vmem:[%s1027_s2] ss:$0 sm:$0xff]  ;;  %v235_v12 = vld [vmem:[#allocation7 + $0x70] sm:$0xff]  ;;  %v234_v13 = vld [vmem:[#allocation7 + $0x68] sm:$0xff]  ;;  %s509_s29 = sshll.u32 %s850_s28, 4  ;;  %s510_s29 = int_to_ptr.vmem [resolvable:$true] %s509_s29 }
  0x3f   :  { %584 = vmatpush3.msra.mxu0 %v109_v1  ;;  %v236_v11 = vld [vmem:[#allocation7 + $0x78] sm:$0xff]  ;;  %v233_v14 = vld [vmem:[#allocation7 + $0x60] sm:$0xff]  ;;  %v231_v16 = vld [vmem:[#allocation7 + $0x50] sm:$0xff]  ;;  %s813_s30 = scalar_lea.vmem %s510_s29, 128  ;;  %p818_p12 = scmp.lt.s32.totalorder %s510_s29, %s510_s29 }
  0x40   :  { %585 = vmatprep.subr.mxu0 %v848_v0  ;;  %595 = vmatpush3.msra.mxu1 %v236_v11  ;;  %v232_v15 = vld [vmem:[#allocation7 + $0x58] sm:$0xff]  ;;  %v230_v17 = vld [vmem:[#allocation7 + $0x48] sm:$0xff]  ;;  %v229_v18 = vld [vmem:[#allocation7 + $0x40] sm:$0xff]  ;;  %p814_p11 = scmp.ne.s32.totalorder %s510_s29, %s813_s30  ;;  %p819_p13 = scmp.lt.s32.totalorder %s813_s30, %s813_s30 }
  0x41   :  { %586 = vmatpush3.msra.mxu0 %v108_v2  ;;  %596 = vmatprep.subr.mxu1 %v848_v0  ;;  %v228_v19 = vld [vmem:[#allocation7 + $0x38] sm:$0xff]  ;;  %v227_v20 = vld [vmem:[#allocation7 + $0x30] sm:$0xff]  ;;  %v226_v21 = vld [vmem:[#allocation7 + $0x28] sm:$0xff] }
  0x42   :  { %587 = vmatprep.subr.mxu0 %v848_v0  ;;  %597 = vmatpush3.msra.mxu1 %v235_v12  ;;  %v225_v22 = vld [vmem:[#allocation7 + $0x20] sm:$0xff]  ;;  %v224_v23 = vld [vmem:[#allocation7 + $0x18] sm:$0xff]  ;;  %v223_v24 = vld [vmem:[#allocation7 + $0x10] sm:$0xff]  ;;  %p820_p0 = por %p819_p13, %p818_p12 }
  0x43   :  { %588 = vmatpush3.msra.mxu0 %v107_v3  ;;  %598 = vmatprep.subr.mxu1 %v848_v0  ;;  %v222_v25 = vld [vmem:[#allocation7 + $0x8] sm:$0xff]  ;;  %v221_v26 = vld [vmem:[#allocation7] sm:$0xff]  ;;  %v330_v27 = vld [vmem:[#allocation8 + $0x78] sm:$0xff] }
  0x44   :  { %589 = vmatprep.subr.mxu0 %v848_v0  ;;  %599 = vmatpush3.msra.mxu1 %v234_v13  ;;  %v329_v28 = vld [vmem:[#allocation8 + $0x70] sm:$0xff]  ;;  %v328_v29 = vld [vmem:[#allocation8 + $0x68] sm:$0xff]  ;;  %v327_v30 = vld [vmem:[#allocation8 + $0x60] sm:$0xff]  ;;  %p821_p1 = pnand %p820_p0, %p814_p11 }
  0x45   :  { %590 = vmatpush3.msra.mxu0 %v106_v4  ;;  %600 = vmatprep.subr.mxu1 %v848_v0  ;;  %v326_v31 = vld [vmem:[#allocation8 + $0x58] sm:$0xff]  ;;  %v325_v32 = vld [vmem:[#allocation8 + $0x50] sm:$0xff]  ;;  %v324_v33 = vld [vmem:[#allocation8 + $0x48] sm:$0xff] }
  0x46   :  { %592 = vmatmul.mubr.msk.f32.vlgmr.msra.gmra.mxu0 %vm117_vm1, %v105_v5  ;;  %629 = vmatprep.subr.mxu0 %v848_v0  ;;  %v323_v34 = vld [vmem:[#allocation8 + $0x40] sm:$0xff]  ;;  %v322_v35 = vld [vmem:[#allocation8 + $0x38] sm:$0xff]  ;;  %v321_v36 = vld [vmem:[#allocation8 + $0x30] sm:$0xff] }
  0x47   :  { %661 = vmatprep.mubr.msk.f32.mxu0 %vm849_vm0, %v848_v0  ;;  %601 = vmatpush3.msra.mxu1 %v233_v14  ;;  %v320_v37 = vld [vmem:[#allocation8 + $0x28] sm:$0xff]  ;;  %v319_v38 = vld [vmem:[#allocation8 + $0x20] sm:$0xff]  ;;  %v318_v39 = vld [vmem:[#allocation8 + $0x18] sm:$0xff] }
  0x48   :  { %602 = vmatprep.subr.mxu1 %v848_v0  ;;  %630 = vmatpush3.msra.mxu0 %v330_v27  ;;  %v522_v49 = vld [vmem:[%s1028_s3] ss:$0 sm:$0xff]  ;;  %v317_v55 = vld [vmem:[#allocation8 + $0x10] sm:$0xff]  ;;  %v316_v56 = vld [vmem:[#allocation8 + $0x8] sm:$0xff] }
  0x49   :  { %603 = vmatpush3.msra.mxu1 %v232_v15  ;;  %631 = vmatprep.subr.mxu0 %v848_v0  ;;  %v523_v51 = vld [vmem:[%s1029_s4] ss:$0 sm:$0xff]  ;;  %v315_v57 = vld [vmem:[#allocation8] sm:$0xff]  ;;  %v423_v59 = vld [vmem:[#allocation10 + $0x70] sm:$0xff] }
  0x4a   :  { %604 = vmatprep.subr.mxu1 %v848_v0  ;;  %632 = vmatpush3.msra.mxu0 %v329_v28  ;;  %v424_v58 = vld [vmem:[#allocation10 + $0x78] sm:$0xff]  ;;  %v422_v60 = vld [vmem:[#allocation10 + $0x68] sm:$0xff]  ;;  %v421_v61 = vld [vmem:[#allocation10 + $0x60] sm:$0xff] }
  0x4b   :  { %605 = vmatpush3.msra.mxu1 %v231_v16  ;;  %633 = vmatprep.subr.mxu0 %v848_v0  ;;  %v420_v62 = vld [vmem:[#allocation10 + $0x58] sm:$0xff]  ;;  %v419_v63 = vld [vmem:[#allocation10 + $0x50] sm:$0xff]  ;;  %v418_v1 = vld [vmem:[#allocation10 + $0x48] sm:$0xff] }
  0x4c   :  { %606 = vmatprep.subr.mxu1 %v848_v0  ;;  %634 = vmatpush3.msra.mxu0 %v328_v29  ;;  %v417_v2 = vld [vmem:[#allocation10 + $0x40] sm:$0xff]  ;;  %v416_v3 = vld [vmem:[#allocation10 + $0x38] sm:$0xff]  ;;  %v415_v4 = vld [vmem:[#allocation10 + $0x30] sm:$0xff] }
  0x4d   :  { %607 = vmatpush3.msra.mxu1 %v230_v17  ;;  %635 = vmatprep.subr.mxu0 %v848_v0  ;;  %v414_v5 = vld [vmem:[#allocation10 + $0x28] sm:$0xff]  ;;  %v411_v13 = vld [vmem:[#allocation10 + $0x10] sm:$0xff]  ;;  %v409_v15 = vld [vmem:[#allocation10] sm:$0xff] }
  0x4e   :  { %608 = vmatprep.subr.mxu1 %v848_v0  ;;  %636 = vmatpush3.msra.mxu0 %v327_v30  ;;  %v410_v14 = vld [vmem:[#allocation10 + $0x8] sm:$0xff]  ;;  %v525_v16 = vld [vmem:[%s1033_s8] ss:$0 sm:$0xff] }
  0x4f   :  { %609 = vmatpush3.msra.mxu1 %v229_v18  ;;  %637 = vmatprep.subr.mxu0 %v848_v0 }
  0x50   :  { %610 = vmatprep.subr.mxu1 %v848_v0  ;;  %638 = vmatpush3.msra.mxu0 %v326_v31 }
  0x51   :  { %611 = vmatpush3.msra.mxu1 %v228_v19  ;;  %639 = vmatprep.subr.mxu0 %v848_v0 }
  0x52   :  { %612 = vmatprep.subr.mxu1 %v848_v0  ;;  %640 = vmatpush3.msra.mxu0 %v325_v32 }
  0x53   :  { %613 = vmatpush3.msra.mxu1 %v227_v20  ;;  %641 = vmatprep.subr.mxu0 %v848_v0 }
  0x54   :  { %614 = vmatprep.subr.mxu1 %v848_v0  ;;  %642 = vmatpush3.msra.mxu0 %v324_v33 }
  0x55   :  { %615 = vmatpush3.msra.mxu1 %v226_v21  ;;  %643 = vmatprep.subr.mxu0 %v848_v0  ;;  %v526_v21 = vld [vmem:[%s1035_s10] ss:$0 sm:$0xff] }
  0x56   :  { %616 = vmatprep.subr.mxu1 %v848_v0  ;;  %644 = vmatpush3.msra.mxu0 %v323_v34 }
  0x57   :  { %617 = vmatpush3.msra.mxu1 %v225_v22  ;;  %645 = vmatprep.subr.mxu0 %v848_v0 }
  0x58   :  { %618 = vmatprep.subr.mxu1 %v848_v0  ;;  %646 = vmatpush3.msra.mxu0 %v322_v35 }
  0x59   :  { %619 = vmatpush3.msra.mxu1 %v224_v23  ;;  %647 = vmatprep.subr.mxu0 %v848_v0 }
  0x5a   :  { %620 = vmatprep.subr.mxu1 %v848_v0  ;;  %648 = vmatpush3.msra.mxu0 %v321_v36 }
  0x5b   :  { %621 = vmatpush3.msra.mxu1 %v223_v24  ;;  %649 = vmatprep.subr.mxu0 %v848_v0 }
  0x5c   :  { %622 = vmatprep.subr.mxu1 %v848_v0  ;;  %650 = vmatpush3.msra.mxu0 %v320_v37 }
  0x5d   :  { %623 = vmatpush3.msra.mxu1 %v222_v25  ;;  %651 = vmatprep.subr.mxu0 %v848_v0 }
  0x5e   :  { %624 = vmatprep.subr.mxu1 %v848_v0  ;;  %652 = vmatpush3.msra.mxu0 %v319_v38 }
  0x5f   :  { %625 = vmatpush3.msra.mxu1 %v221_v26  ;;  %653 = vmatprep.subr.mxu0 %v848_v0 }
  0x60   :  { %664 = vmatprep.subr.mxu1 %v848_v0  ;;  %654 = vmatpush3.msra.mxu0 %v318_v39 }
  0x61   :  { %655 = vmatprep.subr.mxu0 %v848_v0 }
  0x62   :  { %656 = vmatpush3.msra.mxu0 %v317_v55 }
  0x63   :  { %657 = vmatprep.subr.mxu0 %v848_v0 }
  0x64   :  { %658 = vmatpush3.msra.mxu0 %v316_v56 }
  0x65   :  { %659 = vmatprep.subr.mxu0 %v848_v0 }
  0x66   :  { %660 = vmatpush3.msra.mxu0 %v315_v57 }
 0x106   :  { %v187_v7 = vpop.f32.mrf.mxu0 }
 0x107   :  { %v953_v8 = vadd.f32 %v520_v6, %v187_v7  ;;  %v413_v6 = vld [vmem:[#allocation10 + $0x20] sm:$0xff]  ;;  %v412_v7 = vld [vmem:[#allocation10 + $0x18] sm:$0xff] }
 0x108   :  { %v593_v9 = vpop.f32.mrf.mxu0 }
 0x109   :  { %191 = vadd.xlane.f32.xlu0 %v953_v8  ;;  %v193_v10 = vmul.f32 %v953_v8, %v953_v8 }
 0x10d   :  { %194 = vadd.xlane.f32.xlu0 %v193_v10 }
 0x192   :  { %v192_v40 = vpop.xlane.xlu0 %191 }
 0x193   :  { %v196_v41 = vmul.f32 0.015625, %v192_v40 }
 0x195   :  { %v198_v43 = vmul.f32 %v196_v41, %v196_v41  ;;  %v200_v47 = vsub.f32 %v953_v8, %v196_v41  ;;  %v524_v8 = vld [vmem:[%s1031_s6] ss:$0 sm:$0xff] }
 0x196   :  { %v195_v42 = vpop.xlane.xlu0 %194 }
 0x197   :  { %v197_v44 = vmul.f32 0.015625, %v195_v42 }
 0x199   :  { %v199_v45 = vsub.f32 %v197_v44, %v198_v43 }
 0x19b   :  { %v201_v46 = vadd.f32 1e-05, %v199_v45 }
 0x19d   :  { %709 = vrsqrt.f32 %v201_v46 }
 0x1aa   :  { %v710_v48 = vpop.eup %709 }
 0x1ab   :  { %v203_v50 = vmul.f32 %v710_v48, %v200_v47 }
 0x1ad   :  { %v211_v52 = vmul.f32 %v522_v49, %v203_v50 }
 0x1af   :  { %v219_v53 = vadd.f32 %v523_v51, %v211_v52 }
 0x1b1   :  { %711 = vtanh.f32 %v219_v53 }
 0x1be   :  { %v712_v54 = vpop.eup %711 }
 0x1bf   :  { %627 = vmatmul.mubr.f32.vlgmr.msra.gmra.mxu1 %v712_v54 }
 0x1c0   :  { %696 = vmatprep.mubr.msk.f32.mxu1 %vm849_vm0, %v848_v0  ;;  %665 = vmatpush3.msra.mxu1 %v424_v58 }
 0x1c1   :  { %666 = vmatprep.subr.mxu1 %v848_v0 }
 0x1c2   :  { %667 = vmatpush3.msra.mxu1 %v423_v59 }
 0x1c3   :  { %668 = vmatprep.subr.mxu1 %v848_v0 }
 0x1c4   :  { %669 = vmatpush3.msra.mxu1 %v422_v60 }
 0x1c5   :  { %670 = vmatprep.subr.mxu1 %v848_v0 }
 0x1c6   :  { %671 = vmatpush3.msra.mxu1 %v421_v61 }
 0x1c7   :  { %672 = vmatprep.subr.mxu1 %v848_v0 }
 0x1c8   :  { %673 = vmatpush3.msra.mxu1 %v420_v62 }
 0x1c9   :  { %674 = vmatprep.subr.mxu1 %v848_v0 }
 0x1ca   :  { %675 = vmatpush3.msra.mxu1 %v419_v63 }
 0x1cb   :  { %676 = vmatprep.subr.mxu1 %v848_v0 }
 0x1cc   :  { %677 = vmatpush3.msra.mxu1 %v418_v1 }
 0x1cd   :  { %678 = vmatprep.subr.mxu1 %v848_v0 }
 0x1ce   :  { %679 = vmatpush3.msra.mxu1 %v417_v2 }
 0x1cf   :  { %680 = vmatprep.subr.mxu1 %v848_v0 }
 0x1d0   :  { %681 = vmatpush3.msra.mxu1 %v416_v3 }
 0x1d1   :  { %682 = vmatprep.subr.mxu1 %v848_v0 }
 0x1d2   :  { %683 = vmatpush3.msra.mxu1 %v415_v4 }
 0x1d3   :  { %684 = vmatprep.subr.mxu1 %v848_v0 }
 0x1d4   :  { %685 = vmatpush3.msra.mxu1 %v414_v5 }
 0x1d5   :  { %686 = vmatprep.subr.mxu1 %v848_v0 }
 0x1d6   :  { %687 = vmatpush3.msra.mxu1 %v413_v6 }
 0x1d7   :  { %688 = vmatprep.subr.mxu1 %v848_v0 }
 0x1d8   :  { %689 = vmatpush3.msra.mxu1 %v412_v7 }
 0x1d9   :  { %690 = vmatprep.subr.mxu1 %v848_v0 }
 0x1da   :  { %691 = vmatpush3.msra.mxu1 %v411_v13 }
 0x1db   :  { %692 = vmatprep.subr.mxu1 %v848_v0 }
 0x1dc   :  { %693 = vmatpush3.msra.mxu1 %v410_v14 }
 0x1dd   :  { %694 = vmatprep.subr.mxu1 %v848_v0 }
 0x1de   :  { %695 = vmatpush3.msra.mxu1 %v409_v15 }
 0x27f   :  { %v310_v9 = vpop.f32.mrf.mxu1 }
 0x280   :  { %v311_v10 = vadd.f32 %v524_v8, %v310_v9 }
 0x281   :  { %v628_v11 = vpop.f32.mrf.mxu1 }
 0x282   :  { %v314_v12 = vmax.f32 %v311_v10, 0.0 }
 0x284   :  { %662 = vmatmul.mubr.f32.vlgmr.msra.gmra.mxu0 %v314_v12 }
 0x344   :  { %v404_v17 = vpop.f32.mrf.mxu0 }
 0x345   :  { %v405_v18 = vadd.f32 %v525_v16, %v404_v17 }
 0x346   :  { %v663_v19 = vpop.f32.mrf.mxu0 }
 0x347   :  { %v408_v20 = vmax.f32 %v405_v18, 0.0 }
 0x349   :  { %697 = vmatmul.mubr.f32.vlgmr.msra.gmra.mxu1 %v408_v20 }
 0x409   :  { %v498_v22 = vpop.f32.mrf.mxu1 }
 0x40a   :  { %v499_v23 = vadd.f32 %v526_v21, %v498_v22 }
 0x40b   :  { %v698_v0 = vpop.f32.mrf.mxu1 }
 0x40c   :  { %502 = vst [vmem:[#allocation11] sm:$0xff] %v499_v23 }
 0x40d   :  { %824 = shalt.err (!%p821_p1)
}
 0x40e   :  { %512 = dma.vmem_to_hbm [thread:$0]  %s510_s29, 128, %s1036_s11, [#allocation4]  }
 0x40f   :  { %839 = dma.done.wait [#allocation4], 128  }
 0x410   :  { %840 = vsyncadd [#allocation4], 4294967168 }
 0x411   :  { %516 = vsyncpa [#allocation3], 1 }
 0x412   :  { %517 = vsyncpa [#allocation6], 1 }
 0x413   :  { %518 = vsyncpa [#allocation9], 1 }
 0x414   :  { %519 = vsyncpa [#allocation4], 1 }

</bundles_post_ra>
